<compile_context>
chip_gen: v5e
topology: v5e:2x2
jax: 0.10.0
libtpu: 0.0.40
codegen_flags: <defaults>
</compile_context>

<pallas_src>
import jax
import jax.numpy as jnp
from jax import lax
from jax.experimental import pallas as pl
from jax.experimental.pallas import tpu as pltpu


def lstm_kernel(x_ref, wih_ref, whh_ref, b_ref, h_out_ref, xw_ref):
    """x_ref: (T, D); wih_ref: (D, 4H); whh_ref: (H, 4H); b_ref: (1, 4H).
    Gate columns arrive pre-permuted as [i, f, o, g]."""
    T = x_ref.shape[0]
    H = whh_ref.shape[0]

    # Hoisted input projection: one batched MXU matmul for all timesteps.
    xw_ref[...] = (jnp.dot(x_ref[...], wih_ref[...],
                           preferred_element_type=jnp.float32)
                   + b_ref[...])

    whh = whh_ref[...]                                  # resident (H, 4H)

    def step(t, carry):
        h, c = carry                                    # (1, H) register carries
        gates = xw_ref[pl.ds(t, 1), :] + jnp.dot(
            h, whh, preferred_element_type=jnp.float32)  # (1, 4H)
        # Gate layout [i, f, o, g]: one contiguous sigmoid slab + one tanh slab.
        sig = jax.nn.sigmoid(gates[:, :3 * H])
        g_g = jnp.tanh(gates[:, 3 * H:])
        i_g = sig[:, 0 * H:1 * H]
        f_g = sig[:, 1 * H:2 * H]
        o_g = sig[:, 2 * H:3 * H]
        c_new = f_g * c + i_g * g_g
        h_new = o_g * jnp.tanh(c_new)
        return h_new, c_new

    h0 = jnp.zeros((1, H), jnp.float32)
    c0 = jnp.zeros((1, H), jnp.float32)
    h_last, _ = lax.fori_loop(0, T, step, (h0, c0), unroll=True)
    h_out_ref[...] = h_last


def lstm_forward(x, w_ih, w_hh, b, w_lin, b_lin):
    """x: (T, D).  Weights pre-transposed: w_ih (D, 4H), w_hh (H, 4H), b (1, 4H)
    in torch gate order [i, f, g, o]; w_lin (H, O), b_lin (1, O).
    Returns predictions[-1] of shape (O,)."""
    T, D = x.shape
    H = w_hh.shape[0]
    O = w_lin.shape[1]

    # Wrapper-side gate-column permutation [i, f, g, o] -> [i, f, o, g].
    def perm(m):
        return jnp.concatenate([m[:, :2 * H], m[:, 3 * H:], m[:, 2 * H:3 * H]],
                               axis=1)

    w_ih_p, w_hh_p, b_p = perm(w_ih), perm(w_hh), perm(b)

    h_last = pl.pallas_call(
        lstm_kernel,
        out_shape=jax.ShapeDtypeStruct((1, H), jnp.float32),
        grid_spec=pltpu.PrefetchScalarGridSpec(
            num_scalar_prefetch=0,
            grid=(1,),                                   # single grid point
            in_specs=[
                pl.BlockSpec((T, D), lambda i: (0, 0)),        # whole sequence
                pl.BlockSpec((D, 4 * H), lambda i: (0, 0)),    # W_ih^T (permuted)
                pl.BlockSpec((H, 4 * H), lambda i: (0, 0)),    # W_hh^T (permuted)
                pl.BlockSpec((1, 4 * H), lambda i: (0, 0)),    # b_ih + b_hh
            ],
            out_specs=pl.BlockSpec((1, H), lambda i: (0, 0)),  # last hidden state
            scratch_shapes=[
                pltpu.VMEM((T, 4 * H), jnp.float32),           # hoisted x @ W_ih
            ],
        ),
        compiler_params=pltpu.CompilerParams(
            dimension_semantics=("arbitrary",)),               # sequential recurrence
    )(x, w_ih_p, w_hh_p, b_p)

    # Final Linear on the last hidden state (O=1, runs once) in plain JAX.
    return (h_last @ w_lin + b_lin).reshape(O)


def lstm_ref(x, w_ih, w_hh, b, w_lin, b_lin):
    """Pure-JAX reference matching torch.nn.LSTM semantics (gate order i,f,g,o)."""
    T, D = x.shape
    H = w_hh.shape[0]
    h = jnp.zeros((1, H), jnp.float32)
    c = jnp.zeros((1, H), jnp.float32)
    for t in range(T):
        gates = x[t:t + 1] @ w_ih + h @ w_hh + b
        i = jax.nn.sigmoid(gates[:, 0 * H:1 * H])
        f = jax.nn.sigmoid(gates[:, 1 * H:2 * H])
        g = jnp.tanh(gates[:, 2 * H:3 * H])
        o = jax.nn.sigmoid(gates[:, 3 * H:4 * H])
        c = f * c + i * g
        h = o * jnp.tanh(c)
    return (h @ w_lin + b_lin).reshape(-1)


if __name__ == "__main__":
    # Small shapes consistent with the module's forward (batch=1 fixed by the code).
    T, D, H, O = 8, 64, 32, 1

    key = jax.random.PRNGKey(0)
    ks = jax.random.split(key, 7)
    scale = 1.0 / jnp.sqrt(H)
    # Deterministic synthetic parameters (uniform(-1/sqrt(H), 1/sqrt(H)), like torch).
    w_ih = jax.random.uniform(ks[0], (D, 4 * H), jnp.float32, -scale, scale)
    w_hh = jax.random.uniform(ks[1], (H, 4 * H), jnp.float32, -scale, scale)
    b = (jax.random.uniform(ks[2], (1, 4 * H), jnp.float32, -scale, scale)
         + jax.random.uniform(ks[3], (1, 4 * H), jnp.float32, -scale, scale))
    w_lin = jax.random.uniform(ks[4], (H, O), jnp.float32, -scale, scale)
    b_lin = jax.random.uniform(ks[5], (1, O), jnp.float32, -scale, scale)

    x = jax.random.normal(ks[6], (T, D), jnp.float32)

    pred = lstm_forward(x, w_ih, w_hh, b, w_lin, b_lin)
    jax.block_until_ready(pred)

    ref = lstm_ref(x, w_ih, w_hh, b, w_lin, b_lin)
    assert pred.shape == (O,)
    assert jnp.allclose(pred, ref, atol=1e-5, rtol=1e-5), (pred, ref)
    print("KERNEL_OK")
</pallas_src>

<mosaic_0001>
module attributes {stable_mosaic.version = 11 : i64} {
  func.func @lstm_kernel(%arg0: i32, %arg1: memref<8x64xf32, #tpu.memory_space<vmem>>, %arg2: memref<64x128xf32, #tpu.memory_space<vmem>>, %arg3: memref<32x128xf32, #tpu.memory_space<vmem>>, %arg4: memref<1x128xf32, #tpu.memory_space<vmem>>, %arg5: memref<1x32xf32, #tpu.memory_space<vmem>>, %arg6: memref<8x128xf32, #tpu.memory_space<vmem>>) attributes {dimension_semantics = [#tpu.dimension_semantics<arbitrary>], iteration_bounds = array<i64: 1>, scalar_prefetch = 0 : i64, scratch_operands = 1 : i64, tpu.core_type = #tpu.core_type<tc>, window_params = [{pipeline_mode = #tpu.pipeline_mode<synchronous>, transform_indices = @transform_0, window_bounds = array<i64: 8, 64>}, {pipeline_mode = #tpu.pipeline_mode<synchronous>, transform_indices = @transform_1, window_bounds = array<i64: 64, 128>}, {pipeline_mode = #tpu.pipeline_mode<synchronous>, transform_indices = @transform_2, window_bounds = array<i64: 32, 128>}, {pipeline_mode = #tpu.pipeline_mode<synchronous>, transform_indices = @transform_3, window_bounds = array<i64: 1, 128>}, {pipeline_mode = #tpu.pipeline_mode<synchronous>, transform_indices = @transform_4, window_bounds = array<i64: 1, 32>}]} {
    %c0 = arith.constant 0 : index
    %c0_0 = arith.constant 0 : index
    %0 = vector.load %arg1[%c0, %c0_0] : memref<8x64xf32, #tpu.memory_space<vmem>>, vector<8x64xf32>
    %c0_1 = arith.constant 0 : index
    %c0_2 = arith.constant 0 : index
    %1 = vector.load %arg2[%c0_1, %c0_2] : memref<64x128xf32, #tpu.memory_space<vmem>>, vector<64x128xf32>
    %cst = arith.constant dense<0.000000e+00> : vector<8x128xf32>
    %2 = tpu.matmul %0, %1, %cst {dimension_numbers = #tpu.dot_dimension_numbers<[1], [0], [0], [1], [0, 0, 1, 1], [], []>} : vector<8x64xf32>, vector<64x128xf32>, vector<8x128xf32> -> vector<8x128xf32>
    %c0_3 = arith.constant 0 : index
    %c0_4 = arith.constant 0 : index
    %3 = vector.load %arg4[%c0_3, %c0_4] : memref<1x128xf32, #tpu.memory_space<vmem>>, vector<1x128xf32>
    %4 = vector.broadcast %3 : vector<1x128xf32> to vector<8x128xf32>
    %5 = arith.addf %2, %4 : vector<8x128xf32>
    %c0_5 = arith.constant 0 : index
    %c0_6 = arith.constant 0 : index
    %6 = vector.load %arg6[%c0_5, %c0_6] : memref<8x128xf32, #tpu.memory_space<vmem>>, vector<8x128xf32>
    tpu.vector_store %arg6[%c0_5, %c0_6], %5 {strides = array<i32>} : memref<8x128xf32, #tpu.memory_space<vmem>>, vector<8x128xf32>,
    %c0_7 = arith.constant 0 : index
    %c0_8 = arith.constant 0 : index
    %7 = vector.load %arg3[%c0_7, %c0_8] : memref<32x128xf32, #tpu.memory_space<vmem>>, vector<32x128xf32>
    %cst_9 = arith.constant 0.000000e+00 : f32
    %8 = vector.broadcast %cst_9 : f32 to vector<1x32xf32>
    %cst_10 = arith.constant 0.000000e+00 : f32
    %9 = vector.broadcast %cst_10 : f32 to vector<1x32xf32>
    %c0_i32 = arith.constant 0 : i32
    %10 = arith.index_cast %c0_i32 : i32 to index
    %c0_11 = arith.constant 0 : index
    %11 = vector.load %arg6[%10, %c0_11] : memref<8x128xf32, #tpu.memory_space<vmem>>, vector<1x128xf32>
    %cst_12 = arith.constant dense<0.000000e+00> : vector<1x128xf32>
    %12 = tpu.matmul %8, %7, %cst_12 {dimension_numbers = #tpu.dot_dimension_numbers<[1], [0], [0], [1], [0, 0, 1, 1], [], []>} : vector<1x32xf32>, vector<32x128xf32>, vector<1x128xf32> -> vector<1x128xf32>
    %13 = arith.addf %11, %12 : vector<1x128xf32>
    %14 = vector.extract_strided_slice %13 {offsets = [0, 0], sizes = [1, 96], strides = [1, 1]} : vector<1x128xf32> to vector<1x96xf32>
    %15 = arith.negf %14 : vector<1x96xf32>
    %16 = math.exp %15 : vector<1x96xf32>
    %cst_13 = arith.constant 1.000000e+00 : f32
    %17 = vector.broadcast %cst_13 : f32 to vector<1x96xf32>
    %18 = arith.addf %17, %16 : vector<1x96xf32>
    %19 = arith.divf %17, %18 : vector<1x96xf32>
    %20 = vector.extract_strided_slice %13 {offsets = [0, 96], sizes = [1, 32], strides = [1, 1]} : vector<1x128xf32> to vector<1x32xf32>
    %21 = math.tanh %20 : vector<1x32xf32>
    %22 = vector.extract_strided_slice %19 {offsets = [0, 0], sizes = [1, 32], strides = [1, 1]} : vector<1x96xf32> to vector<1x32xf32>
    %23 = vector.extract_strided_slice %19 {offsets = [0, 32], sizes = [1, 32], strides = [1, 1]} : vector<1x96xf32> to vector<1x32xf32>
    %24 = vector.extract_strided_slice %19 {offsets = [0, 64], sizes = [1, 32], strides = [1, 1]} : vector<1x96xf32> to vector<1x32xf32>
    %25 = arith.mulf %23, %9 : vector<1x32xf32>
    %26 = arith.mulf %22, %21 : vector<1x32xf32>
    %27 = arith.addf %25, %26 : vector<1x32xf32>
    %28 = math.tanh %27 : vector<1x32xf32>
    %29 = arith.mulf %24, %28 : vector<1x32xf32>
    %c1_i32 = arith.constant 1 : i32
    %30 = arith.index_cast %c1_i32 : i32 to index
    %c0_14 = arith.constant 0 : index
    %31 = vector.load %arg6[%30, %c0_14] : memref<8x128xf32, #tpu.memory_space<vmem>>, vector<1x128xf32>
    %cst_15 = arith.constant dense<0.000000e+00> : vector<1x128xf32>
    %32 = tpu.matmul %29, %7, %cst_15 {dimension_numbers = #tpu.dot_dimension_numbers<[1], [0], [0], [1], [0, 0, 1, 1], [], []>} : vector<1x32xf32>, vector<32x128xf32>, vector<1x128xf32> -> vector<1x128xf32>
    %33 = arith.addf %31, %32 : vector<1x128xf32>
    %34 = vector.extract_strided_slice %33 {offsets = [0, 0], sizes = [1, 96], strides = [1, 1]} : vector<1x128xf32> to vector<1x96xf32>
    %35 = arith.negf %34 : vector<1x96xf32>
    %36 = math.exp %35 : vector<1x96xf32>
    %cst_16 = arith.constant 1.000000e+00 : f32
    %37 = vector.broadcast %cst_16 : f32 to vector<1x96xf32>
    %38 = arith.addf %37, %36 : vector<1x96xf32>
    %39 = arith.divf %37, %38 : vector<1x96xf32>
    %40 = vector.extract_strided_slice %33 {offsets = [0, 96], sizes = [1, 32], strides = [1, 1]} : vector<1x128xf32> to vector<1x32xf32>
    %41 = math.tanh %40 : vector<1x32xf32>
    %42 = vector.extract_strided_slice %39 {offsets = [0, 0], sizes = [1, 32], strides = [1, 1]} : vector<1x96xf32> to vector<1x32xf32>
    %43 = vector.extract_strided_slice %39 {offsets = [0, 32], sizes = [1, 32], strides = [1, 1]} : vector<1x96xf32> to vector<1x32xf32>
    %44 = vector.extract_strided_slice %39 {offsets = [0, 64], sizes = [1, 32], strides = [1, 1]} : vector<1x96xf32> to vector<1x32xf32>
    %45 = arith.mulf %43, %27 : vector<1x32xf32>
    %46 = arith.mulf %42, %41 : vector<1x32xf32>
    %47 = arith.addf %45, %46 : vector<1x32xf32>
    %48 = math.tanh %47 : vector<1x32xf32>
    %49 = arith.mulf %44, %48 : vector<1x32xf32>
    %c2_i32 = arith.constant 2 : i32
    %50 = arith.index_cast %c2_i32 : i32 to index
    %c0_17 = arith.constant 0 : index
    %51 = vector.load %arg6[%50, %c0_17] : memref<8x128xf32, #tpu.memory_space<vmem>>, vector<1x128xf32>
    %cst_18 = arith.constant dense<0.000000e+00> : vector<1x128xf32>
    %52 = tpu.matmul %49, %7, %cst_18 {dimension_numbers = #tpu.dot_dimension_numbers<[1], [0], [0], [1], [0, 0, 1, 1], [], []>} : vector<1x32xf32>, vector<32x128xf32>, vector<1x128xf32> -> vector<1x128xf32>
    %53 = arith.addf %51, %52 : vector<1x128xf32>
    %54 = vector.extract_strided_slice %53 {offsets = [0, 0], sizes = [1, 96], strides = [1, 1]} : vector<1x128xf32> to vector<1x96xf32>
    %55 = arith.negf %54 : vector<1x96xf32>
    %56 = math.exp %55 : vector<1x96xf32>
    %cst_19 = arith.constant 1.000000e+00 : f32
    %57 = vector.broadcast %cst_19 : f32 to vector<1x96xf32>
    %58 = arith.addf %57, %56 : vector<1x96xf32>
    %59 = arith.divf %57, %58 : vector<1x96xf32>
    %60 = vector.extract_strided_slice %53 {offsets = [0, 96], sizes = [1, 32], strides = [1, 1]} : vector<1x128xf32> to vector<1x32xf32>
    %61 = math.tanh %60 : vector<1x32xf32>
    %62 = vector.extract_strided_slice %59 {offsets = [0, 0], sizes = [1, 32], strides = [1, 1]} : vector<1x96xf32> to vector<1x32xf32>
    %63 = vector.extract_strided_slice %59 {offsets = [0, 32], sizes = [1, 32], strides = [1, 1]} : vector<1x96xf32> to vector<1x32xf32>
    %64 = vector.extract_strided_slice %59 {offsets = [0, 64], sizes = [1, 32], strides = [1, 1]} : vector<1x96xf32> to vector<1x32xf32>
    %65 = arith.mulf %63, %47 : vector<1x32xf32>
    %66 = arith.mulf %62, %61 : vector<1x32xf32>
    %67 = arith.addf %65, %66 : vector<1x32xf32>
    %68 = math.tanh %67 : vector<1x32xf32>
    %69 = arith.mulf %64, %68 : vector<1x32xf32>
    %c3_i32 = arith.constant 3 : i32
    %70 = arith.index_cast %c3_i32 : i32 to index
    %c0_20 = arith.constant 0 : index
    %71 = vector.load %arg6[%70, %c0_20] : memref<8x128xf32, #tpu.memory_space<vmem>>, vector<1x128xf32>
    %cst_21 = arith.constant dense<0.000000e+00> : vector<1x128xf32>
    %72 = tpu.matmul %69, %7, %cst_21 {dimension_numbers = #tpu.dot_dimension_numbers<[1], [0], [0], [1], [0, 0, 1, 1], [], []>} : vector<1x32xf32>, vector<32x128xf32>, vector<1x128xf32> -> vector<1x128xf32>
    %73 = arith.addf %71, %72 : vector<1x128xf32>
    %74 = vector.extract_strided_slice %73 {offsets = [0, 0], sizes = [1, 96], strides = [1, 1]} : vector<1x128xf32> to vector<1x96xf32>
    %75 = arith.negf %74 : vector<1x96xf32>
    %76 = math.exp %75 : vector<1x96xf32>
    %cst_22 = arith.constant 1.000000e+00 : f32
    %77 = vector.broadcast %cst_22 : f32 to vector<1x96xf32>
    %78 = arith.addf %77, %76 : vector<1x96xf32>
    %79 = arith.divf %77, %78 : vector<1x96xf32>
    %80 = vector.extract_strided_slice %73 {offsets = [0, 96], sizes = [1, 32], strides = [1, 1]} : vector<1x128xf32> to vector<1x32xf32>
    %81 = math.tanh %80 : vector<1x32xf32>
    %82 = vector.extract_strided_slice %79 {offsets = [0, 0], sizes = [1, 32], strides = [1, 1]} : vector<1x96xf32> to vector<1x32xf32>
    %83 = vector.extract_strided_slice %79 {offsets = [0, 32], sizes = [1, 32], strides = [1, 1]} : vector<1x96xf32> to vector<1x32xf32>
    %84 = vector.extract_strided_slice %79 {offsets = [0, 64], sizes = [1, 32], strides = [1, 1]} : vector<1x96xf32> to vector<1x32xf32>
    %85 = arith.mulf %83, %67 : vector<1x32xf32>
    %86 = arith.mulf %82, %81 : vector<1x32xf32>
    %87 = arith.addf %85, %86 : vector<1x32xf32>
    %88 = math.tanh %87 : vector<1x32xf32>
    %89 = arith.mulf %84, %88 : vector<1x32xf32>
    %c4_i32 = arith.constant 4 : i32
    %90 = arith.index_cast %c4_i32 : i32 to index
    %c0_23 = arith.constant 0 : index
    %91 = vector.load %arg6[%90, %c0_23] : memref<8x128xf32, #tpu.memory_space<vmem>>, vector<1x128xf32>
    %cst_24 = arith.constant dense<0.000000e+00> : vector<1x128xf32>
    %92 = tpu.matmul %89, %7, %cst_24 {dimension_numbers = #tpu.dot_dimension_numbers<[1], [0], [0], [1], [0, 0, 1, 1], [], []>} : vector<1x32xf32>, vector<32x128xf32>, vector<1x128xf32> -> vector<1x128xf32>
    %93 = arith.addf %91, %92 : vector<1x128xf32>
    %94 = vector.extract_strided_slice %93 {offsets = [0, 0], sizes = [1, 96], strides = [1, 1]} : vector<1x128xf32> to vector<1x96xf32>
    %95 = arith.negf %94 : vector<1x96xf32>
    %96 = math.exp %95 : vector<1x96xf32>
    %cst_25 = arith.constant 1.000000e+00 : f32
    %97 = vector.broadcast %cst_25 : f32 to vector<1x96xf32>
    %98 = arith.addf %97, %96 : vector<1x96xf32>
    %99 = arith.divf %97, %98 : vector<1x96xf32>
    %100 = vector.extract_strided_slice %93 {offsets = [0, 96], sizes = [1, 32], strides = [1, 1]} : vector<1x128xf32> to vector<1x32xf32>
    %101 = math.tanh %100 : vector<1x32xf32>
    %102 = vector.extract_strided_slice %99 {offsets = [0, 0], sizes = [1, 32], strides = [1, 1]} : vector<1x96xf32> to vector<1x32xf32>
    %103 = vector.extract_strided_slice %99 {offsets = [0, 32], sizes = [1, 32], strides = [1, 1]} : vector<1x96xf32> to vector<1x32xf32>
    %104 = vector.extract_strided_slice %99 {offsets = [0, 64], sizes = [1, 32], strides = [1, 1]} : vector<1x96xf32> to vector<1x32xf32>
    %105 = arith.mulf %103, %87 : vector<1x32xf32>
    %106 = arith.mulf %102, %101 : vector<1x32xf32>
    %107 = arith.addf %105, %106 : vector<1x32xf32>
    %108 = math.tanh %107 : vector<1x32xf32>
    %109 = arith.mulf %104, %108 : vector<1x32xf32>
    %c5_i32 = arith.constant 5 : i32
    %110 = arith.index_cast %c5_i32 : i32 to index
    %c0_26 = arith.constant 0 : index
    %111 = vector.load %arg6[%110, %c0_26] : memref<8x128xf32, #tpu.memory_space<vmem>>, vector<1x128xf32>
    %cst_27 = arith.constant dense<0.000000e+00> : vector<1x128xf32>
    %112 = tpu.matmul %109, %7, %cst_27 {dimension_numbers = #tpu.dot_dimension_numbers<[1], [0], [0], [1], [0, 0, 1, 1], [], []>} : vector<1x32xf32>, vector<32x128xf32>, vector<1x128xf32> -> vector<1x128xf32>
    %113 = arith.addf %111, %112 : vector<1x128xf32>
    %114 = vector.extract_strided_slice %113 {offsets = [0, 0], sizes = [1, 96], strides = [1, 1]} : vector<1x128xf32> to vector<1x96xf32>
    %115 = arith.negf %114 : vector<1x96xf32>
    %116 = math.exp %115 : vector<1x96xf32>
    %cst_28 = arith.constant 1.000000e+00 : f32
    %117 = vector.broadcast %cst_28 : f32 to vector<1x96xf32>
    %118 = arith.addf %117, %116 : vector<1x96xf32>
    %119 = arith.divf %117, %118 : vector<1x96xf32>
    %120 = vector.extract_strided_slice %113 {offsets = [0, 96], sizes = [1, 32], strides = [1, 1]} : vector<1x128xf32> to vector<1x32xf32>
    %121 = math.tanh %120 : vector<1x32xf32>
    %122 = vector.extract_strided_slice %119 {offsets = [0, 0], sizes = [1, 32], strides = [1, 1]} : vector<1x96xf32> to vector<1x32xf32>
    %123 = vector.extract_strided_slice %119 {offsets = [0, 32], sizes = [1, 32], strides = [1, 1]} : vector<1x96xf32> to vector<1x32xf32>
    %124 = vector.extract_strided_slice %119 {offsets = [0, 64], sizes = [1, 32], strides = [1, 1]} : vector<1x96xf32> to vector<1x32xf32>
    %125 = arith.mulf %123, %107 : vector<1x32xf32>
    %126 = arith.mulf %122, %121 : vector<1x32xf32>
    %127 = arith.addf %125, %126 : vector<1x32xf32>
    %128 = math.tanh %127 : vector<1x32xf32>
    %129 = arith.mulf %124, %128 : vector<1x32xf32>
    %c6_i32 = arith.constant 6 : i32
    %130 = arith.index_cast %c6_i32 : i32 to index
    %c0_29 = arith.constant 0 : index
    %131 = vector.load %arg6[%130, %c0_29] : memref<8x128xf32, #tpu.memory_space<vmem>>, vector<1x128xf32>
    %cst_30 = arith.constant dense<0.000000e+00> : vector<1x128xf32>
    %132 = tpu.matmul %129, %7, %cst_30 {dimension_numbers = #tpu.dot_dimension_numbers<[1], [0], [0], [1], [0, 0, 1, 1], [], []>} : vector<1x32xf32>, vector<32x128xf32>, vector<1x128xf32> -> vector<1x128xf32>
    %133 = arith.addf %131, %132 : vector<1x128xf32>
    %134 = vector.extract_strided_slice %133 {offsets = [0, 0], sizes = [1, 96], strides = [1, 1]} : vector<1x128xf32> to vector<1x96xf32>
    %135 = arith.negf %134 : vector<1x96xf32>
    %136 = math.exp %135 : vector<1x96xf32>
    %cst_31 = arith.constant 1.000000e+00 : f32
    %137 = vector.broadcast %cst_31 : f32 to vector<1x96xf32>
    %138 = arith.addf %137, %136 : vector<1x96xf32>
    %139 = arith.divf %137, %138 : vector<1x96xf32>
    %140 = vector.extract_strided_slice %133 {offsets = [0, 96], sizes = [1, 32], strides = [1, 1]} : vector<1x128xf32> to vector<1x32xf32>
    %141 = math.tanh %140 : vector<1x32xf32>
    %142 = vector.extract_strided_slice %139 {offsets = [0, 0], sizes = [1, 32], strides = [1, 1]} : vector<1x96xf32> to vector<1x32xf32>
    %143 = vector.extract_strided_slice %139 {offsets = [0, 32], sizes = [1, 32], strides = [1, 1]} : vector<1x96xf32> to vector<1x32xf32>
    %144 = vector.extract_strided_slice %139 {offsets = [0, 64], sizes = [1, 32], strides = [1, 1]} : vector<1x96xf32> to vector<1x32xf32>
    %145 = arith.mulf %143, %127 : vector<1x32xf32>
    %146 = arith.mulf %142, %141 : vector<1x32xf32>
    %147 = arith.addf %145, %146 : vector<1x32xf32>
    %148 = math.tanh %147 : vector<1x32xf32>
    %149 = arith.mulf %144, %148 : vector<1x32xf32>
    %c7_i32 = arith.constant 7 : i32
    %150 = arith.index_cast %c7_i32 : i32 to index
    %c0_32 = arith.constant 0 : index
    %151 = vector.load %arg6[%150, %c0_32] : memref<8x128xf32, #tpu.memory_space<vmem>>, vector<1x128xf32>
    %cst_33 = arith.constant dense<0.000000e+00> : vector<1x128xf32>
    %152 = tpu.matmul %149, %7, %cst_33 {dimension_numbers = #tpu.dot_dimension_numbers<[1], [0], [0], [1], [0, 0, 1, 1], [], []>} : vector<1x32xf32>, vector<32x128xf32>, vector<1x128xf32> -> vector<1x128xf32>
    %153 = arith.addf %151, %152 : vector<1x128xf32>
    %154 = vector.extract_strided_slice %153 {offsets = [0, 0], sizes = [1, 96], strides = [1, 1]} : vector<1x128xf32> to vector<1x96xf32>
    %155 = arith.negf %154 : vector<1x96xf32>
    %156 = math.exp %155 : vector<1x96xf32>
    %cst_34 = arith.constant 1.000000e+00 : f32
    %157 = vector.broadcast %cst_34 : f32 to vector<1x96xf32>
    %158 = arith.addf %157, %156 : vector<1x96xf32>
    %159 = arith.divf %157, %158 : vector<1x96xf32>
    %160 = vector.extract_strided_slice %153 {offsets = [0, 96], sizes = [1, 32], strides = [1, 1]} : vector<1x128xf32> to vector<1x32xf32>
    %161 = math.tanh %160 : vector<1x32xf32>
    %162 = vector.extract_strided_slice %159 {offsets = [0, 0], sizes = [1, 32], strides = [1, 1]} : vector<1x96xf32> to vector<1x32xf32>
    %163 = vector.extract_strided_slice %159 {offsets = [0, 32], sizes = [1, 32], strides = [1, 1]} : vector<1x96xf32> to vector<1x32xf32>
    %164 = vector.extract_strided_slice %159 {offsets = [0, 64], sizes = [1, 32], strides = [1, 1]} : vector<1x96xf32> to vector<1x32xf32>
    %165 = arith.mulf %163, %147 : vector<1x32xf32>
    %166 = arith.mulf %162, %161 : vector<1x32xf32>
    %167 = arith.addf %165, %166 : vector<1x32xf32>
    %168 = math.tanh %167 : vector<1x32xf32>
    %169 = arith.mulf %164, %168 : vector<1x32xf32>
    %c8_i32 = arith.constant 8 : i32
    %c0_35 = arith.constant 0 : index
    %c0_36 = arith.constant 0 : index
    %170 = vector.load %arg5[%c0_35, %c0_36] : memref<1x32xf32, #tpu.memory_space<vmem>>, vector<1x32xf32>
    tpu.vector_store %arg5[%c0_35, %c0_36], %169 {strides = array<i32>} : memref<1x32xf32, #tpu.memory_space<vmem>>, vector<1x32xf32>,
    return
  }
  func.func @transform_0(%arg0: i32) -> (i32, i32) {
    %c0_i32 = arith.constant 0 : i32
    %c0_i32_0 = arith.constant 0 : i32
    %c0_i32_1 = arith.constant 0 : i32
    return %c0_i32, %c0_i32_0 : i32, i32
  }
  func.func @transform_1(%arg0: i32) -> (i32, i32) {
    %c0_i32 = arith.constant 0 : i32
    %c0_i32_0 = arith.constant 0 : i32
    %c0_i32_1 = arith.constant 0 : i32
    return %c0_i32, %c0_i32_0 : i32, i32
  }
  func.func @transform_2(%arg0: i32) -> (i32, i32) {
    %c0_i32 = arith.constant 0 : i32
    %c0_i32_0 = arith.constant 0 : i32
    %c0_i32_1 = arith.constant 0 : i32
    return %c0_i32, %c0_i32_0 : i32, i32
  }
  func.func @transform_3(%arg0: i32) -> (i32, i32) {
    %c0_i32 = arith.constant 0 : i32
    %c0_i32_0 = arith.constant 0 : i32
    %c0_i32_1 = arith.constant 0 : i32
    return %c0_i32, %c0_i32_0 : i32, i32
  }
  func.func @transform_4(%arg0: i32) -> (i32, i32) {
    %c0_i32 = arith.constant 0 : i32
    %c0_i32_0 = arith.constant 0 : i32
    %c0_i32_1 = arith.constant 0 : i32
    return %c0_i32, %c0_i32_0 : i32, i32
  }
}

</mosaic_0001>

<bundles_post_ra>
// kernel: tpu_custom_call.1
= control target key start
LH: loop header
LB: loop body
LE: loop exit
PB: predicated region body
PF: predicated region fallthrough
CT: control target
= control target key end

     0   :  { %9 = vsyncpa [#allocation4], 0  ;;  %s920_s0 = inlined_call_operand.hbm [shape: f32[8,64], index: 0, kind: input, shape index: {}]   ;;  %s921_s1 = inlined_call_operand.hbm [shape: f32[64,128], index: 1, kind: input, shape index: {}]   ;;  %s922_s2 = inlined_call_operand.hbm [shape: f32[32,128], index: 2, kind: input, shape index: {}]   ;;  %s923_s3 = inlined_call_operand.vmem [shape: f32[1,128], index: 3, kind: input, shape index: {}]   ;;  %s924_s4 = inlined_call_operand.hbm [shape: f32[1,32], index: 4, kind: output, shape index: {}]  }
   0x1   :  { %10 = vsyncpa [#allocation7], 0  ;;  %s27_s17 = sshll.u32 %s921_s1, 4  ;;  %s28_s17 = int_to_ptr.hbm [resolvable:$true] %s27_s17 }
   0x2   :  { %11 = vsyncpa [#allocation5], 0  ;;  %s832_s18 = smov [#allocation6]   ;;  %s17_s22 = sshll.u32 %s920_s0, 4  ;;  %s18_s22 = int_to_ptr.hbm [resolvable:$true] %s17_s22 }
   0x3   :  { %s29_s19 = sshll.u32 %s832_s18, 4  ;;  %s833_s23 = smov 128   ;;  %s30_s19 = int_to_ptr.vmem [resolvable:$true] %s29_s19 }
   0x4   :  { %s834_s24 = smov 8   ;;  %s835_s25 = smov [#allocation3]  }
   0x5   :  { %35 = dma.hbm_to_vmem [thread:$0]  %s28_s17, 1024, %s30_s19, [#allocation7], %s833_s23, %s833_s23, %s834_s24  }
   0x6   :  { %s19_s26 = sshll.u32 %s835_s25, 4  ;;  %s40_s29 = sshll.u32 %s922_s2, 4  ;;  %s20_s26 = int_to_ptr.vmem [resolvable:$true] %s19_s26  ;;  %s41_s29 = int_to_ptr.hbm [resolvable:$true] %s40_s29 }
   0x7   :  { %22 = dma.hbm_to_vmem [thread:$0]  %s18_s22, 128, %s20_s26, [#allocation4]  }
   0x8   :  { %s836_s1 = smov [#allocation8]  }
   0x9   :  { %s42_s30 = sshll.u32 %s836_s1, 4  ;;  %s43_s30 = int_to_ptr.vmem [resolvable:$true] %s42_s30 }
   0xa   :  { %48 = dma.hbm_to_vmem [thread:$0]  %s41_s29, 512, %s43_s30, [#allocation7], %s833_s23, %s833_s23, %s834_s24  }
   0xb   :  { %826 = dma.done.wait [#allocation4], 128  }
   0xc   :  { %827 = vsyncadd [#allocation4], 4294967168 }
   0xd   :  { %828 = dma.done.wait [#allocation7], 1536  }
   0xe   :  { %829 = vsyncadd [#allocation7], 4294965760  ;;  %v71_v0 = vld [vmem:[#allocation6 + $0x38] sm:$0xff]  ;;  %v70_v1 = vld [vmem:[#allocation6 + $0x30] sm:$0xff]  ;;  %v837_v11 = vmov 0.0   ;;  %vm76_vm0 = vcmask 523264  }
   0xf   :  { %88 = vmatpush.msra.mxu0 %v71_v0  ;;  %v69_v2 = vld [vmem:[#allocation6 + $0x28] sm:$0xff]  ;;  %v104_v3 = vld [vmem:[#allocation8 + $0x18] sm:$0xff]  ;;  %v103_v4 = vld [vmem:[#allocation8 + $0x10] sm:$0xff]  ;;  %s838_s5 = smov 32   ;;  %vm106_vm5 = vcmask 261120   ;;  %s840_s6 = smov [#allocation9]  }
  0x10   :  { %v68_v5 = vld [vmem:[#allocation6 + $0x20] sm:$0xff]  ;;  %122 = vmatpush.msra.mxu1 %v104_v3  ;;  %186 = vmatpush.msra.mxu2 %v104_v3  ;;  %v102_v6 = vld [vmem:[#allocation8 + $0x8] sm:$0xff]  ;;  %v67_v7 = vld [vmem:[#allocation6 + $0x18] sm:$0xff]  ;;  %s627_s7 = sshll.u32 %s840_s6, 4  ;;  %s629_s10 = sshll.u32 %s924_s4, 4  ;;  %s628_s7 = int_to_ptr.vmem [resolvable:$true] %s627_s7  ;;  %s630_s10 = int_to_ptr.hbm [resolvable:$true] %s629_s10 }
  0x11   :  { %89 = vmatpush.msra.mxu0 %v70_v1  ;;  %250 = vmatpush.msra.mxu3 %v104_v3  ;;  %v101_v8 = vld [vmem:[#allocation8] sm:$0xff]  ;;  %v66_v9 = vld [vmem:[#allocation6 + $0x10] sm:$0xff]  ;;  %v65_v10 = vld [vmem:[#allocation6 + $0x8] sm:$0xff] }
  0x12   :  { %123 = vmatpush.msra.mxu1 %v103_v4  ;;  %187 = vmatpush.msra.mxu2 %v103_v4  ;;  %v64_v12 = vld [vmem:[#allocation6] sm:$0xff]  ;;  %v63_v13 = vld [vmem:[#allocation3] sm:$0xff]  ;;  %v665_v14 = vld [vmem:[%s923_s3] ss:$0 sm:$0xff]  ;;  %s839_s3 = smov 64  }
  0x13   :  { %90 = vmatpush.msra.mxu0 %v69_v2  ;;  %251 = vmatpush.msra.mxu3 %v103_v4 }
  0x14   :  { %124 = vmatpush.msra.mxu1 %v102_v6  ;;  %188 = vmatpush.msra.mxu2 %v102_v6 }
  0x15   :  { %91 = vmatpush.msra.mxu0 %v68_v5  ;;  %252 = vmatpush.msra.mxu3 %v102_v6 }
  0x16   :  { %125 = vmatpush.msra.mxu1 %v101_v8  ;;  %189 = vmatpush.msra.mxu2 %v101_v8 }
  0x17   :  { %92 = vmatpush.msra.mxu0 %v67_v7  ;;  %126 = vmatmul.f32.vlgmr.msra.gmra.mxu1 %v837_v11 }
  0x18   :  { %253 = vmatpush.msra.mxu3 %v101_v8  ;;  %314 = vmatpush.msrb.mxu1 %v104_v3 }
  0x19   :  { %93 = vmatpush.msra.mxu0 %v66_v9  ;;  %378 = vmatpush.msrb.mxu2 %v104_v3 }
  0x1a   :  { %315 = vmatpush.msrb.mxu1 %v103_v4  ;;  %442 = vmatpush.msrb.mxu3 %v104_v3 }
  0x1b   :  { %94 = vmatpush.msra.mxu0 %v65_v10  ;;  %379 = vmatpush.msrb.mxu2 %v103_v4 }
  0x1c   :  { %316 = vmatpush.msrb.mxu1 %v102_v6  ;;  %443 = vmatpush.msrb.mxu3 %v103_v4 }
  0x1d   :  { %95 = vmatpush.msra.mxu0 %v64_v12  ;;  %380 = vmatpush.msrb.mxu2 %v102_v6 }
  0x1e   :  { %640 = vmatmul.msk.f32.vlgmr.msra.gmra.mxu0 %vm76_vm0, %v63_v13  ;;  %317 = vmatpush.msrb.mxu1 %v101_v8 }
  0x1f   :  { %506 = vmatpush.msrb.mxu0 %v104_v3  ;;  %381 = vmatpush.msrb.mxu2 %v101_v8 }
  0x20   :  { %444 = vmatpush.msrb.mxu3 %v102_v6  ;;  %570 = vmatpush.msra.mxu1 %v104_v3 }
  0x21   :  { %507 = vmatpush.msrb.mxu0 %v103_v4 }
  0x22   :  { %445 = vmatpush.msrb.mxu3 %v101_v8  ;;  %571 = vmatpush.msra.mxu1 %v103_v4 }
  0x23   :  { %508 = vmatpush.msrb.mxu0 %v102_v6 }
  0x24   :  { %572 = vmatpush.msra.mxu1 %v102_v6 }
  0x25   :  { %509 = vmatpush.msrb.mxu0 %v101_v8 }
  0x26   :  { %573 = vmatpush.msra.mxu1 %v101_v8 }
  0x94   :  { %v127_v17 = vpop.f32.mrf.mxu1 }
  0x9b   :  { %v97_v15 = vpop.f32.mrf.mxu0 }
  0x9c   :  { %v98_v16 = vadd.f32 %v665_v14, %v97_v15 }
  0x9e   :  { %100 = vst [vmem:[#allocation2] sm:$0xff] %v98_v16 }
  0xa5   :  { %v105_v18 = vld [vmem:[#allocation2] sm:$0x1]  ;;  %v168_v43 = vld [vmem:[#allocation2 + $0x1] sm:$0x1]  ;;  %v232_v5 = vld [vmem:[#allocation2 + $0x2] sm:$0x1] }
  0xa6   :  { %v130_v19 = vadd.f32 %v127_v17, %v105_v18 }
  0xa8   :  { %666 = vtanh.f32 %v130_v19  ;;  %v641_v21 = vmul.f32 -1.442695, %v130_v19 }
  0xaa   :  { %668 = vpow2.f32 %v641_v21 }
  0xae   :  { %v667_v20 = vpop.eup %666 }
  0xaf   :  { %153 = vrot.lane.b32.xlu0 %v667_v20, %s838_s5 }
  0xb0   :  { %v669_v22 = vpop.eup %668 }
  0xb1   :  { %v134_v23 = vadd.f32 1.0, %v669_v22 }
  0xb3   :  { %670 = vrcp.f32 %v134_v23  ;;  %v146_v29 = vand.u32 2147483648, %v134_v23  ;;  %vm140_vm2 = vweird.f32 %v134_v23  ;;  %v144_v30 = vand.u32 2147483647, %v134_v23 }
  0xb5   :  { %v147_v32 = vor.u32 1.1754944e-38, %v146_v29  ;;  %vm145_vm4 = vcmp.eq.f32.partialorder %v144_v30, 8.507059e+37 }
  0xb9   :  { %v671_v24 = vpop.eup %670 }
  0xba   :  { %v136_v25 = vmul.f32 %v671_v24, %v134_v23  ;;  %vm141_vm1 = vweird.f32 %v671_v24 }
  0xbb   :  { %vm142_vm3 = vmor %vm140_vm2, %vm141_vm1 }
  0xbc   :  { %v137_v26 = vsub.f32 1.0, %v136_v25 }
  0xbe   :  { %v138_v27 = vmul.f32 %v671_v24, %v137_v26 }
  0xc0   :  { %v139_v28 = vadd.f32 %v671_v24, %v138_v27 }
  0xc2   :  { %v143_v31 = vsel %vm142_vm3, %v671_v24, %v139_v28 }
  0xc3   :  { %v148_v34 = vsel %vm145_vm4, %v147_v32, %v143_v31  ;;  %v296_v31 = vld [vmem:[#allocation2 + $0x3] sm:$0x1] }
  0xc4   :  { %v151_v36 = vmul.f32 0.0, %v148_v34 }
 0x121   :  { %v154_v33 = vpop.permute.xlu0 %153 }
 0x122   :  { %v156_v35 = vmul.f32 %v154_v33, %v148_v34 }
 0x124   :  { %158 = vrot.lane.b32.xlu0 %v156_v35, %s838_s5 }
 0x196   :  { %v159_v37 = vpop.permute.xlu0 %158 }
 0x197   :  { %v161_v38 = vadd.f32 %v159_v37, %v151_v36 }
 0x199   :  { %672 = vtanh.f32 %v161_v38 }
 0x19f   :  { %v673_v39 = vpop.eup %672 }
 0x1a0   :  { %164 = vrot.lane.b32.xlu1 %v673_v39, %s838_s5 }
 0x212   :  { %v165_v40 = vpop.permute.xlu1 %164 }
 0x213   :  { %v167_v41 = vmul.f32 %v165_v40, %v148_v34 }
 0x215   :  { %170 = vrot.lane.b32.xlu1 %v167_v41, %s839_s3 }
 0x287   :  { %v171_v42 = vpop.permute.xlu1 %170 }
 0x288   :  { %642 = vmatmul.msk.f32.vlgmr.msra.gmra.mxu2 %vm106_vm5, %v171_v42 }
 0x30b   :  { %v191_v44 = vpop.f32.mrf.mxu2 }
 0x30c   :  { %v194_v45 = vadd.f32 %v191_v44, %v168_v43 }
 0x30e   :  { %674 = vtanh.f32 %v194_v45  ;;  %v643_v47 = vmul.f32 -1.442695, %v194_v45 }
 0x310   :  { %676 = vpow2.f32 %v643_v47 }
 0x314   :  { %v675_v46 = vpop.eup %674 }
 0x315   :  { %217 = vrot.lane.b32.xlu2 %v675_v46, %s838_s5 }
 0x316   :  { %v677_v48 = vpop.eup %676 }
 0x317   :  { %v198_v49 = vadd.f32 1.0, %v677_v48 }
 0x319   :  { %678 = vrcp.f32 %v198_v49  ;;  %v210_v55 = vand.u32 2147483648, %v198_v49  ;;  %vm204_vm7 = vweird.f32 %v198_v49  ;;  %v208_v56 = vand.u32 2147483647, %v198_v49 }
 0x31b   :  { %v211_v58 = vor.u32 1.1754944e-38, %v210_v55  ;;  %vm209_vm9 = vcmp.eq.f32.partialorder %v208_v56, 8.507059e+37 }
 0x31f   :  { %v679_v50 = vpop.eup %678 }
 0x320   :  { %v200_v51 = vmul.f32 %v679_v50, %v198_v49  ;;  %vm205_vm6 = vweird.f32 %v679_v50 }
 0x321   :  { %vm206_vm8 = vmor %vm204_vm7, %vm205_vm6 }
 0x322   :  { %v201_v52 = vsub.f32 1.0, %v200_v51 }
 0x324   :  { %v202_v53 = vmul.f32 %v679_v50, %v201_v52 }
 0x326   :  { %v203_v54 = vadd.f32 %v679_v50, %v202_v53 }
 0x328   :  { %v207_v57 = vsel %vm206_vm8, %v679_v50, %v203_v54 }
 0x329   :  { %v212_v60 = vsel %vm209_vm9, %v211_v58, %v207_v57  ;;  %v360_v57 = vld [vmem:[#allocation2 + $0x4] sm:$0x1] }
 0x32a   :  { %v215_v62 = vmul.f32 %v212_v60, %v161_v38 }
 0x36f   :  { %v218_v59 = vpop.permute.xlu2 %217 }
 0x370   :  { %v220_v61 = vmul.f32 %v218_v59, %v212_v60 }
 0x372   :  { %222 = vrot.lane.b32.xlu2 %v220_v61, %s838_s5 }
 0x3cc   :  { %v223_v63 = vpop.permute.xlu2 %222 }
 0x3cd   :  { %v225_v0 = vadd.f32 %v223_v63, %v215_v62 }
 0x3cf   :  { %680 = vtanh.f32 %v225_v0 }
 0x3d5   :  { %v681_v1 = vpop.eup %680 }
 0x3d6   :  { %228 = vrot.lane.b32.xlu0 %v681_v1, %s838_s5 }
 0x448   :  { %v229_v2 = vpop.permute.xlu0 %228 }
 0x449   :  { %v231_v3 = vmul.f32 %v229_v2, %v212_v60 }
 0x44b   :  { %234 = vrot.lane.b32.xlu1 %v231_v3, %s839_s3 }
 0x4bd   :  { %v235_v4 = vpop.permute.xlu1 %234 }
 0x4be   :  { %644 = vmatmul.msk.f32.vlgmr.msra.gmra.mxu3 %vm106_vm5, %v235_v4 }
 0x541   :  { %v255_v6 = vpop.f32.mrf.mxu3 }
 0x542   :  { %v258_v7 = vadd.f32 %v255_v6, %v232_v5 }
 0x544   :  { %682 = vtanh.f32 %v258_v7  ;;  %v645_v9 = vmul.f32 -1.442695, %v258_v7 }
 0x546   :  { %684 = vpow2.f32 %v645_v9 }
 0x54a   :  { %v683_v8 = vpop.eup %682 }
 0x54b   :  { %281 = vrot.lane.b32.xlu2 %v683_v8, %s838_s5 }
 0x54c   :  { %v685_v10 = vpop.eup %684 }
 0x54d   :  { %v262_v11 = vadd.f32 1.0, %v685_v10 }
 0x54f   :  { %686 = vrcp.f32 %v262_v11  ;;  %v274_v17 = vand.u32 2147483648, %v262_v11  ;;  %vm268_vm11 = vweird.f32 %v262_v11  ;;  %v272_v18 = vand.u32 2147483647, %v262_v11 }
 0x551   :  { %v275_v20 = vor.u32 1.1754944e-38, %v274_v17  ;;  %vm273_vm13 = vcmp.eq.f32.partialorder %v272_v18, 8.507059e+37 }
 0x555   :  { %v687_v12 = vpop.eup %686 }
 0x556   :  { %v264_v13 = vmul.f32 %v687_v12, %v262_v11  ;;  %vm269_vm10 = vweird.f32 %v687_v12 }
 0x557   :  { %vm270_vm12 = vmor %vm268_vm11, %vm269_vm10 }
 0x558   :  { %v265_v14 = vsub.f32 1.0, %v264_v13 }
 0x55a   :  { %v266_v15 = vmul.f32 %v687_v12, %v265_v14 }
 0x55c   :  { %v267_v16 = vadd.f32 %v687_v12, %v266_v15 }
 0x55e   :  { %v271_v19 = vsel %vm270_vm12, %v687_v12, %v267_v16 }
 0x55f   :  { %v276_v22 = vsel %vm273_vm13, %v275_v20, %v271_v19  ;;  %v424_v19 = vld [vmem:[#allocation2 + $0x5] sm:$0x1] }
 0x560   :  { %v279_v24 = vmul.f32 %v276_v22, %v225_v0 }
 0x5a5   :  { %v282_v21 = vpop.permute.xlu2 %281 }
 0x5a6   :  { %v284_v23 = vmul.f32 %v282_v21, %v276_v22 }
 0x5a8   :  { %286 = vrot.lane.b32.xlu0 %v284_v23, %s838_s5 }
 0x61a   :  { %v287_v25 = vpop.permute.xlu0 %286 }
 0x61b   :  { %v289_v26 = vadd.f32 %v287_v25, %v279_v24 }
 0x61d   :  { %688 = vtanh.f32 %v289_v26 }
 0x623   :  { %v689_v27 = vpop.eup %688 }
 0x624   :  { %292 = vrot.lane.b32.xlu1 %v689_v27, %s838_s5 }
 0x696   :  { %v293_v28 = vpop.permute.xlu1 %292 }
 0x697   :  { %v295_v29 = vmul.f32 %v293_v28, %v276_v22 }
 0x699   :  { %298 = vrot.lane.b32.xlu2 %v295_v29, %s839_s3 }
 0x6f3   :  { %v299_v30 = vpop.permute.xlu2 %298 }
 0x6f4   :  { %646 = vmatmul.msk.f32.vlgmr.msrb.gmra.mxu1 %vm106_vm5, %v299_v30 }
 0x771   :  { %v319_v32 = vpop.f32.mrf.mxu1 }
 0x772   :  { %v322_v33 = vadd.f32 %v319_v32, %v296_v31 }
 0x774   :  { %690 = vtanh.f32 %v322_v33  ;;  %v647_v35 = vmul.f32 -1.442695, %v322_v33 }
 0x776   :  { %692 = vpow2.f32 %v647_v35 }
 0x77a   :  { %v691_v34 = vpop.eup %690 }
 0x77b   :  { %345 = vrot.lane.b32.xlu0 %v691_v34, %s838_s5 }
 0x77c   :  { %v693_v36 = vpop.eup %692 }
 0x77d   :  { %v326_v37 = vadd.f32 1.0, %v693_v36 }
 0x77f   :  { %694 = vrcp.f32 %v326_v37  ;;  %v338_v43 = vand.u32 2147483648, %v326_v37  ;;  %vm332_vm15 = vweird.f32 %v326_v37  ;;  %v336_v44 = vand.u32 2147483647, %v326_v37 }
 0x781   :  { %v339_v46 = vor.u32 1.1754944e-38, %v338_v43  ;;  %vm337_vm1 = vcmp.eq.f32.partialorder %v336_v44, 8.507059e+37 }
 0x785   :  { %v695_v38 = vpop.eup %694 }
 0x786   :  { %v328_v39 = vmul.f32 %v695_v38, %v326_v37  ;;  %vm333_vm14 = vweird.f32 %v695_v38 }
 0x787   :  { %vm334_vm0 = vmor %vm332_vm15, %vm333_vm14 }
 0x788   :  { %v329_v40 = vsub.f32 1.0, %v328_v39 }
 0x78a   :  { %v330_v41 = vmul.f32 %v695_v38, %v329_v40 }
 0x78c   :  { %v331_v42 = vadd.f32 %v695_v38, %v330_v41 }
 0x78e   :  { %v335_v45 = vsel %vm334_vm0, %v695_v38, %v331_v42 }
 0x78f   :  { %v340_v48 = vsel %vm337_vm1, %v339_v46, %v335_v45  ;;  %v488_v45 = vld [vmem:[#allocation2 + $0x6] sm:$0x1] }
 0x790   :  { %v343_v50 = vmul.f32 %v340_v48, %v289_v26 }
 0x7ed   :  { %v346_v47 = vpop.permute.xlu0 %345 }
 0x7ee   :  { %v348_v49 = vmul.f32 %v346_v47, %v340_v48 }
 0x7f0   :  { %350 = vrot.lane.b32.xlu1 %v348_v49, %s838_s5 }
 0x862   :  { %v351_v51 = vpop.permute.xlu1 %350 }
 0x863   :  { %v353_v52 = vadd.f32 %v351_v51, %v343_v50 }
 0x865   :  { %696 = vtanh.f32 %v353_v52 }
 0x86b   :  { %v697_v53 = vpop.eup %696 }
 0x86c   :  { %356 = vrot.lane.b32.xlu2 %v697_v53, %s838_s5 }
 0x8c6   :  { %v357_v54 = vpop.permute.xlu2 %356 }
 0x8c7   :  { %v359_v55 = vmul.f32 %v357_v54, %v340_v48 }
 0x8c9   :  { %362 = vrot.lane.b32.xlu0 %v359_v55, %s839_s3 }
 0x93b   :  { %v363_v56 = vpop.permute.xlu0 %362 }
 0x93c   :  { %648 = vmatmul.msk.f32.vlgmr.msrb.gmra.mxu2 %vm106_vm5, %v363_v56 }
 0x9bf   :  { %v383_v58 = vpop.f32.mrf.mxu2 }
 0x9c0   :  { %v386_v59 = vadd.f32 %v383_v58, %v360_v57 }
 0x9c2   :  { %698 = vtanh.f32 %v386_v59  ;;  %v649_v61 = vmul.f32 -1.442695, %v386_v59 }
 0x9c4   :  { %700 = vpow2.f32 %v649_v61 }
 0x9c8   :  { %v699_v60 = vpop.eup %698 }
 0x9c9   :  { %409 = vrot.lane.b32.xlu1 %v699_v60, %s838_s5 }
 0x9ca   :  { %v701_v62 = vpop.eup %700 }
 0x9cb   :  { %v390_v63 = vadd.f32 1.0, %v701_v62 }
 0x9cd   :  { %702 = vrcp.f32 %v390_v63  ;;  %v402_v5 = vand.u32 2147483648, %v390_v63  ;;  %vm396_vm3 = vweird.f32 %v390_v63  ;;  %v400_v6 = vand.u32 2147483647, %v390_v63 }
 0x9cf   :  { %v403_v8 = vor.u32 1.1754944e-38, %v402_v5  ;;  %vm401_vm6 = vcmp.eq.f32.partialorder %v400_v6, 8.507059e+37 }
 0x9d3   :  { %v703_v0 = vpop.eup %702 }
 0x9d4   :  { %v392_v1 = vmul.f32 %v703_v0, %v390_v63  ;;  %vm397_vm2 = vweird.f32 %v703_v0 }
 0x9d5   :  { %vm398_vm4 = vmor %vm396_vm3, %vm397_vm2  ;;  %vm620_vm2 = vcmask 253952  }
 0x9d6   :  { %v393_v2 = vsub.f32 1.0, %v392_v1 }
 0x9d8   :  { %v394_v3 = vmul.f32 %v703_v0, %v393_v2 }
 0x9da   :  { %v395_v4 = vadd.f32 %v703_v0, %v394_v3 }
 0x9dc   :  { %v399_v7 = vsel %vm398_vm4, %v703_v0, %v395_v4 }
 0x9dd   :  { %v404_v10 = vsel %vm401_vm6, %v403_v8, %v399_v7  ;;  %v552_v7 = vld [vmem:[#allocation2 + $0x7] sm:$0x1] }
 0x9de   :  { %v407_v12 = vmul.f32 %v404_v10, %v353_v52 }
 0xa3b   :  { %v410_v9 = vpop.permute.xlu1 %409 }
 0xa3c   :  { %v412_v11 = vmul.f32 %v410_v9, %v404_v10 }
 0xa3e   :  { %414 = vrot.lane.b32.xlu2 %v412_v11, %s838_s5 }
 0xa98   :  { %v415_v13 = vpop.permute.xlu2 %414 }
 0xa99   :  { %v417_v14 = vadd.f32 %v415_v13, %v407_v12 }
 0xa9b   :  { %704 = vtanh.f32 %v417_v14 }
 0xaa1   :  { %v705_v15 = vpop.eup %704 }
 0xaa2   :  { %420 = vrot.lane.b32.xlu0 %v705_v15, %s838_s5 }
 0xb14   :  { %v421_v16 = vpop.permute.xlu0 %420 }
 0xb15   :  { %v423_v17 = vmul.f32 %v421_v16, %v404_v10 }
 0xb17   :  { %426 = vrot.lane.b32.xlu1 %v423_v17, %s839_s3 }
 0xb89   :  { %v427_v18 = vpop.permute.xlu1 %426 }
 0xb8a   :  { %650 = vmatmul.msk.f32.vlgmr.msrb.gmra.mxu3 %vm106_vm5, %v427_v18 }
 0xc0d   :  { %v447_v20 = vpop.f32.mrf.mxu3 }
 0xc0e   :  { %v450_v21 = vadd.f32 %v447_v20, %v424_v19 }
 0xc10   :  { %706 = vtanh.f32 %v450_v21  ;;  %v651_v23 = vmul.f32 -1.442695, %v450_v21 }
 0xc12   :  { %708 = vpow2.f32 %v651_v23 }
 0xc16   :  { %v707_v22 = vpop.eup %706 }
 0xc17   :  { %473 = vrot.lane.b32.xlu2 %v707_v22, %s838_s5 }
 0xc18   :  { %v709_v24 = vpop.eup %708 }
 0xc19   :  { %v454_v25 = vadd.f32 1.0, %v709_v24 }
 0xc1b   :  { %710 = vrcp.f32 %v454_v25  ;;  %v466_v31 = vand.u32 2147483648, %v454_v25  ;;  %vm460_vm8 = vweird.f32 %v454_v25  ;;  %v464_v32 = vand.u32 2147483647, %v454_v25 }
 0xc1d   :  { %v467_v34 = vor.u32 1.1754944e-38, %v466_v31  ;;  %vm465_vm10 = vcmp.eq.f32.partialorder %v464_v32, 8.507059e+37 }
 0xc21   :  { %v711_v26 = vpop.eup %710 }
 0xc22   :  { %v456_v27 = vmul.f32 %v711_v26, %v454_v25  ;;  %vm461_vm7 = vweird.f32 %v711_v26 }
 0xc23   :  { %vm462_vm9 = vmor %vm460_vm8, %vm461_vm7 }
 0xc24   :  { %v457_v28 = vsub.f32 1.0, %v456_v27 }
 0xc26   :  { %v458_v29 = vmul.f32 %v711_v26, %v457_v28 }
 0xc28   :  { %v459_v30 = vadd.f32 %v711_v26, %v458_v29 }
 0xc2a   :  { %v463_v33 = vsel %vm462_vm9, %v711_v26, %v459_v30 }
 0xc2b   :  { %v468_v36 = vsel %vm465_vm10, %v467_v34, %v463_v33 }
 0xc2c   :  { %v471_v38 = vmul.f32 %v468_v36, %v417_v14 }
 0xc71   :  { %v474_v35 = vpop.permute.xlu2 %473 }
 0xc72   :  { %v476_v37 = vmul.f32 %v474_v35, %v468_v36 }
 0xc74   :  { %478 = vrot.lane.b32.xlu0 %v476_v37, %s838_s5 }
 0xce6   :  { %v479_v39 = vpop.permute.xlu0 %478 }
 0xce7   :  { %v481_v40 = vadd.f32 %v479_v39, %v471_v38 }
 0xce9   :  { %712 = vtanh.f32 %v481_v40 }
 0xcef   :  { %v713_v41 = vpop.eup %712 }
 0xcf0   :  { %484 = vrot.lane.b32.xlu1 %v713_v41, %s838_s5 }
 0xd62   :  { %v485_v42 = vpop.permute.xlu1 %484 }
 0xd63   :  { %v487_v43 = vmul.f32 %v485_v42, %v468_v36 }
 0xd65   :  { %490 = vrot.lane.b32.xlu2 %v487_v43, %s839_s3 }
 0xdbf   :  { %v491_v44 = vpop.permute.xlu2 %490 }
 0xdc0   :  { %652 = vmatmul.msk.f32.vlgmr.msrb.gmra.mxu0 %vm106_vm5, %v491_v44 }
 0xe3d   :  { %v511_v46 = vpop.f32.mrf.mxu0 }
 0xe3e   :  { %v514_v47 = vadd.f32 %v511_v46, %v488_v45 }
 0xe40   :  { %714 = vtanh.f32 %v514_v47  ;;  %v653_v49 = vmul.f32 -1.442695, %v514_v47 }
 0xe42   :  { %716 = vpow2.f32 %v653_v49 }
 0xe46   :  { %v715_v48 = vpop.eup %714 }
 0xe47   :  { %537 = vrot.lane.b32.xlu0 %v715_v48, %s838_s5 }
 0xe48   :  { %v717_v50 = vpop.eup %716 }
 0xe49   :  { %v518_v51 = vadd.f32 1.0, %v717_v50 }
 0xe4b   :  { %718 = vrcp.f32 %v518_v51  ;;  %v530_v57 = vand.u32 2147483648, %v518_v51  ;;  %vm524_vm12 = vweird.f32 %v518_v51  ;;  %v528_v58 = vand.u32 2147483647, %v518_v51 }
 0xe4d   :  { %v531_v60 = vor.u32 1.1754944e-38, %v530_v57  ;;  %vm529_vm14 = vcmp.eq.f32.partialorder %v528_v58, 8.507059e+37 }
 0xe51   :  { %v719_v52 = vpop.eup %718 }
 0xe52   :  { %v520_v53 = vmul.f32 %v719_v52, %v518_v51  ;;  %vm525_vm11 = vweird.f32 %v719_v52 }
 0xe53   :  { %vm526_vm13 = vmor %vm524_vm12, %vm525_vm11 }
 0xe54   :  { %v521_v54 = vsub.f32 1.0, %v520_v53 }
 0xe56   :  { %v522_v55 = vmul.f32 %v719_v52, %v521_v54 }
 0xe58   :  { %v523_v56 = vadd.f32 %v719_v52, %v522_v55 }
 0xe5a   :  { %v527_v59 = vsel %vm526_vm13, %v719_v52, %v523_v56 }
 0xe5b   :  { %v532_v62 = vsel %vm529_vm14, %v531_v60, %v527_v59 }
 0xe5c   :  { %v535_v0 = vmul.f32 %v532_v62, %v481_v40 }
 0xeb9   :  { %v538_v61 = vpop.permute.xlu0 %537 }
 0xeba   :  { %v540_v63 = vmul.f32 %v538_v61, %v532_v62 }
 0xebc   :  { %542 = vrot.lane.b32.xlu1 %v540_v63, %s838_s5 }
 0xf2e   :  { %v543_v1 = vpop.permute.xlu1 %542 }
 0xf2f   :  { %v545_v2 = vadd.f32 %v543_v1, %v535_v0 }
 0xf31   :  { %720 = vtanh.f32 %v545_v2 }
 0xf37   :  { %v721_v3 = vpop.eup %720 }
 0xf38   :  { %548 = vrot.lane.b32.xlu2 %v721_v3, %s838_s5 }
 0xf92   :  { %v549_v4 = vpop.permute.xlu2 %548 }
 0xf93   :  { %v551_v5 = vmul.f32 %v549_v4, %v532_v62 }
 0xf95   :  { %554 = vrot.lane.b32.xlu0 %v551_v5, %s839_s3 }
0x1007   :  { %v555_v6 = vpop.permute.xlu0 %554 }
0x1008   :  { %654 = vmatmul.msk.f32.vlgmr.msra.gmra.mxu1 %vm106_vm5, %v555_v6 }
0x1085   :  { %v575_v8 = vpop.f32.mrf.mxu1 }
0x1086   :  { %v578_v9 = vadd.f32 %v575_v8, %v552_v7 }
0x1088   :  { %722 = vtanh.f32 %v578_v9  ;;  %v655_v11 = vmul.f32 -1.442695, %v578_v9 }
0x108a   :  { %724 = vpow2.f32 %v655_v11 }
0x108e   :  { %v723_v10 = vpop.eup %722 }
0x108f   :  { %601 = vrot.lane.b32.xlu1 %v723_v10, %s838_s5 }
0x1090   :  { %v725_v12 = vpop.eup %724 }
0x1091   :  { %v582_v13 = vadd.f32 1.0, %v725_v12 }
0x1093   :  { %726 = vrcp.f32 %v582_v13  ;;  %v594_v19 = vand.u32 2147483648, %v582_v13  ;;  %vm588_vm5 = vweird.f32 %v582_v13  ;;  %v592_v20 = vand.u32 2147483647, %v582_v13 }
0x1095   :  { %v595_v22 = vor.u32 1.1754944e-38, %v594_v19  ;;  %vm593_vm1 = vcmp.eq.f32.partialorder %v592_v20, 8.507059e+37 }
0x1099   :  { %v727_v14 = vpop.eup %726 }
0x109a   :  { %v584_v15 = vmul.f32 %v727_v14, %v582_v13  ;;  %vm589_vm15 = vweird.f32 %v727_v14 }
0x109b   :  { %vm590_vm0 = vmor %vm588_vm5, %vm589_vm15 }
0x109c   :  { %v585_v16 = vsub.f32 1.0, %v584_v15 }
0x109e   :  { %v586_v17 = vmul.f32 %v727_v14, %v585_v16 }
0x10a0   :  { %v587_v18 = vadd.f32 %v727_v14, %v586_v17 }
0x10a2   :  { %v591_v21 = vsel %vm590_vm0, %v727_v14, %v587_v18 }
0x10a3   :  { %v596_v24 = vsel %vm593_vm1, %v595_v22, %v591_v21 }
0x10a4   :  { %v599_v26 = vmul.f32 %v596_v24, %v545_v2 }
0x1101   :  { %v602_v23 = vpop.permute.xlu1 %601 }
0x1102   :  { %v604_v25 = vmul.f32 %v602_v23, %v596_v24 }
0x1104   :  { %606 = vrot.lane.b32.xlu2 %v604_v25, %s838_s5 }
0x115e   :  { %v607_v27 = vpop.permute.xlu2 %606 }
0x115f   :  { %v609_v28 = vadd.f32 %v607_v27, %v599_v26 }
0x1161   :  { %728 = vtanh.f32 %v609_v28 }
0x1167   :  { %v729_v29 = vpop.eup %728 }
0x1168   :  { %612 = vrot.lane.b32.xlu0 %v729_v29, %s838_s5 }
0x11da   :  { %v613_v30 = vpop.permute.xlu0 %612 }
0x11db   :  { %v615_v31 = vmul.f32 %v613_v30, %v596_v24 }
0x11dd   :  { %617 = vrot.lane.b32.xlu1 %v615_v31, %s839_s3 }
0x124f   :  { %v618_v32 = vpop.permute.xlu1 %617 }
0x1250   :  { %621 = vst.msk [vmem:[#allocation9] sm:$0x1] %vm620_vm2, %v618_v32 }
0x1251   :  { %632 = dma.vmem_to_hbm [thread:$0]  %s628_s7, 16, %s630_s10, [#allocation5]  }
0x1252   :  { %830 = dma.done.wait [#allocation5], 16  }
0x1253   :  { %831 = vsyncadd [#allocation5], 4294967280 }
0x1254   :  { %637 = vsyncpa [#allocation4], 1 }
0x1255   :  { %638 = vsyncpa [#allocation7], 1 }
0x1256   :  { %639 = vsyncpa [#allocation5], 1 }

</bundles_post_ra>
